<compile_context>
chip_gen: v7x
topology: tpu7x:2x2x1
jax: 0.10.0
libtpu: 0.0.40
codegen_flags: <defaults>
</compile_context>

<pallas_src>
import functools

import jax
import jax.numpy as jnp
from jax.experimental import pallas as pl
from jax.experimental.pallas import tpu as pltpu


def _round_up(x, m):
    return (int(x) + m - 1) // m * m


def _vmem_plan():
    """(vmem_limit_bytes, per-tile budget) sized to the actual chip generation."""
    cap = 64 << 20                                   # conservative fallback (v7x-sized)
    try:
        info = pltpu.get_tpu_info()
        cap = int(getattr(info, "vmem_capacity_bytes", cap) or cap)
    except Exception:
        pass
    limit = max(min((cap * 3) // 4, 100 << 20), 32 << 20)   # v5e/v6e ~96 MiB, v7x ~48 MiB
    budget = max(limit // 2, 16 << 20)                      # headroom for x2 buffering etc.
    return limit, budget


def _pick_row_tile(H, W, Cin, Cmm, Cs, out_itemsize, single_matmul, budget_bytes,
                   prefer_multi_tile, max_rows=512):
    """Pick an even source-row tile tS and the padded height H_pad (multiple of tS).

    Accounts for VMEM-tile padding of every buffer (x2 pipelining on inputs/outputs),
    the in-kernel im2col slabs and the f32 matmul results.  Prefers the largest tile
    that minimizes row padding; if prefer_multi_tile, prefers >= 2 row tiles so the
    parallel grid spans both TensorCores on v7x.
    """
    r8 = lambda v: _round_up(max(int(v), 1), 8)
    r128 = lambda v: _round_up(max(int(v), 1), 128)

    in_row = r8(W + 2) * r128(Cin) * 2                      # bf16 body rows (VMEM-tiled)
    out_row = 2 * r8(W) * r128(Cs) * out_itemsize           # 2 output rows / source row
    xc_row = r8(W) * r128(3 * Cin) * 2                      # w-im2col slab (bf16)
    x9_row = r8(W) * r128(9 * Cin) * 2 if single_matmul else 0
    f32_row = 3 * W * Cmm * 4                               # live f32 matmul results
    per_row = 3 * in_row + 2 * out_row + xc_row + x9_row + f32_row

    if single_matmul:
        w_bytes = r8(9 * Cin) * (2 * Cmm) * 2
    else:
        w_bytes = 2 * r8(3 * Cin) * (2 * Cmm) * 2
    fixed = 2 * w_bytes + 2 * 8 * Cmm * 4 + 2 * (2 * r8(W + 2) * r128(Cin) * 2) + (2 << 20)

    avail = max(budget_bytes - fixed, 2 * per_row)
    cands = []
    for t in range(2, min(_round_up(H, 2), max_rows) + 1, 2):
        if t * per_row <= avail:
            h_pad = _round_up(H, t)
            cands.append((t, h_pad, h_pad // t))
    if not cands:
        return 2, _round_up(H, 2)

    def pick(cs):
        best = min(cs, key=lambda c: (c[1], -c[0]))          # min padding, then max tile
        return best[0], best[1]

    if prefer_multi_tile:
        multi = [c for c in cands if c[2] >= 2]
        if multi:
            return pick(multi)
    return pick(cands)


def _make_kernel(tS, W, Cin, Cmm, Cs, single_matmul, outermost):
    K = 3 * Cin
    M = tS * W

    if outermost:
        def act(v):                       # explicit sigmoid (EUP exp + div)
            return 1.0 / (1.0 + jnp.exp(-v))
    else:
        def act(v):
            return jnp.maximum(v, 0.0)

    def kernel(body_ref, halo_ref, w_ref, b_ref, o_ref):
        # Halo'd source slab: body = padded rows [i*tS, i*tS+tS), halo = the next 2 rows.
        # TODO(synk): the body copy implied by this row-concat could be avoided with a
        # manual halo'd DMA pipeline; kept on the auto-pipelined BlockSpec path.
        slab = jnp.concatenate([body_ref[...], halo_ref[...]], axis=0)   # (tS+2, W+2, Cin)

        # w-direction im2col (in VMEM only): xc[s, w, kw*Cin + c] = slab[s, w + kw, c]
        xc = jnp.concatenate(
            [slab[:, 0:W, :], slab[:, 1:W + 1, :], slab[:, 2:W + 2, :]], axis=-1)

        b = b_ref[...]                                                   # (1, Cmm) f32

        def store(row_sel, vals):
            o_ref[:, row_sel, :, :] = vals[:, :Cs].reshape(tS, W, Cs).astype(o_ref.dtype)

        if single_matmul:
            # Full 3x3 im2col, ONE MXU pass producing [even | odd] columns.
            x9 = jnp.concatenate([xc[0:tS], xc[1:tS + 1], xc[2:tS + 2]], axis=-1)
            x9 = x9.reshape(M, 3 * K)
            eo = jnp.dot(x9, w_ref[...], preferred_element_type=jnp.float32)  # (M, 2*Cmm)
            store(0, act(eo[:, :Cmm] + b))
            store(1, act(eo[:, Cmm:] + b))
        else:
            top = xc[0:tS].reshape(M, K)          # source rows r-1
            mid = xc[1:tS + 1].reshape(M, K)      # source rows r
            bot = xc[2:tS + 2].reshape(M, K)      # source rows r+1
            w_tb = w_ref[1]                       # (K, 2*Cmm) = [W0 | W2]
            # fused mid matmul: columns [0:Cmm) -> even (W1+W2), [Cmm:) -> odd (W0+W1)
            mid_eo = jnp.dot(mid, w_ref[0], preferred_element_type=jnp.float32)
            even = mid_eo[:, :Cmm] + jnp.dot(top, w_tb[:, :Cmm],
                                             preferred_element_type=jnp.float32)
            store(0, act(even + b))               # store even before computing odd
            odd = mid_eo[:, Cmm:] + jnp.dot(bot, w_tb[:, Cmm:],
                                            preferred_element_type=jnp.float32)
            store(1, act(odd + b))

    return kernel


def up_conv_forward(x_nchw, weight, bias, *, scale_factor=(2, 1), outermost=False):
    """Pallas implementation of up_conv.forward (default use_norm=False path)."""
    # TODO(synk): nn.BatchNorm2d (use_norm=True constructor branch) not implemented;
    # the default constructor (use_norm=False) never uses it.
    N, Cin, H, W = x_nchw.shape
    Cout = weight.shape[0]
    sh, sw = int(scale_factor[0]), int(scale_factor[1])
    if (sh, sw) != (2, 1):
        # TODO(synk): only the module-default scale_factor=(2,1) fast path is implemented.
        raise NotImplementedError("Pallas up_conv kernel supports scale_factor=(2,1) only.")

    out_dtype = x_nchw.dtype
    out_itemsize = jnp.dtype(out_dtype).itemsize
    K = 3 * Cin
    Cmm = _round_up(Cout, 128)                    # matmul width (even/odd split boundary)
    Cs = Cmm if Cout >= 64 else Cout              # stored width: dense only when worth it
    single_matmul = (9 * Cin) <= 256              # one MXU K-pass on v6e/v7x

    vmem_limit, budget = _vmem_plan()
    tS, H_pad = _pick_row_tile(H, W, Cin, Cmm, Cs, out_itemsize, single_matmul,
                               budget, prefer_multi_tile=(N == 1))
    n_tiles = H_pad // tS

    # ---- layout glue only (no upsample / im2col materialized in HBM) ----
    # NCHW -> NHWC, 1 col pad each side, row pad: 1 top + (1 + H_pad - H) bottom, bf16.
    x_nhwc = jnp.transpose(x_nchw, (0, 2, 3, 1))                        # (N, H, W, Cin)
    xp = jnp.pad(x_nhwc, ((0, 0), (1, 1 + H_pad - H), (1, 1), (0, 0))).astype(jnp.bfloat16)

    # Pre-combined weight banks (f32 math, bf16 storage).  Row layout = kw-major/ci-minor
    # (matches xc); column layout = [even | odd] with the split at the Cmm lane boundary.
    w32 = jnp.transpose(weight.astype(jnp.float32), (2, 3, 1, 0))       # (kh, kw, ci, co)
    A = w32[0].reshape(K, Cout)                    # even, source row r-1
    Bk = (w32[1] + w32[2]).reshape(K, Cout)        # even, source row r
    Ck = (w32[0] + w32[1]).reshape(K, Cout)        # odd,  source row r
    D = w32[2].reshape(K, Cout)                    # odd,  source row r+1
    pad_cols = lambda m: jnp.pad(m, ((0, 0), (0, Cmm - Cout)))
    if single_matmul:
        zK = jnp.zeros((K, Cout), jnp.float32)
        w_even = jnp.concatenate([A, Bk, zK], axis=0)                   # (9*Cin, Cout)
        w_odd = jnp.concatenate([zK, Ck, D], axis=0)
        wk = jnp.concatenate([pad_cols(w_even), pad_cols(w_odd)], axis=1).astype(jnp.bfloat16)
        w_spec = pl.BlockSpec((3 * K, 2 * Cmm), lambda n, i: (0, 0))
    else:
        w_mid = jnp.concatenate([pad_cols(Bk), pad_cols(Ck)], axis=1)   # (K, 2*Cmm)
        w_tb = jnp.concatenate([pad_cols(A), pad_cols(D)], axis=1)      # (K, 2*Cmm)
        wk = jnp.stack([w_mid, w_tb], axis=0).astype(jnp.bfloat16)      # (2, K, 2*Cmm)
        w_spec = pl.BlockSpec((2, K, 2 * Cmm), lambda n, i: (0, 0, 0))
    b2 = jnp.pad(bias.astype(jnp.float32), (0, Cmm - Cout)).reshape(1, Cmm)

    kernel = _make_kernel(tS, W, Cin, Cmm, Cs, single_matmul, outermost)

    # Advisory cost model for XLA scheduling around the custom call.
    flops = 2 * N * H_pad * W * ((3 * K) * (2 * Cmm) if single_matmul else K * 4 * Cmm)
    transcendentals = (N * H_pad * 2 * W * Cmm) if outermost else 0
    bytes_accessed = (N * (H_pad + 2) * (W + 2) * Cin * 2
                      + int(wk.size) * 2 + Cmm * 4
                      + N * H_pad * 2 * W * Cs * out_itemsize)

    out = pl.pallas_call(
        kernel,
        out_shape=jax.ShapeDtypeStruct((N, H_pad, 2, W, Cs), out_dtype),
        grid_spec=pltpu.PrefetchScalarGridSpec(
            num_scalar_prefetch=0,
            grid=(N, n_tiles),
            in_specs=[
                # tS source rows owned by this tile (padded rows [i*tS, i*tS+tS))
                pl.BlockSpec((None, tS, W + 2, Cin), lambda n, i: (n, i, 0, 0)),
                # single 2-row halo (padded rows [(i+1)*tS, (i+1)*tS+2)); tS is even
                pl.BlockSpec((None, 2, W + 2, Cin),
                             lambda n, i: (n, (i + 1) * (tS // 2), 0, 0)),
                # weight banks / bias: constant index map, resident in VMEM
                w_spec,
                pl.BlockSpec((1, Cmm), lambda n, i: (0, 0)),
            ],
            out_specs=pl.BlockSpec((None, tS, 2, W, Cs),
                                   lambda n, i: (n, i, 0, 0, 0)),
        ),
        compiler_params=pltpu.CompilerParams(
            dimension_semantics=("parallel", "parallel"),
            vmem_limit_bytes=vmem_limit),
        cost_estimate=pl.CostEstimate(flops=flops,
                                      transcendentals=transcendentals,
                                      bytes_accessed=bytes_accessed),
    )(xp, xp, wk, b2)

    # (N, H_pad, 2, W, Cs): row-pair dim merges contiguously into 2*H_pad (free reshape);
    # drop the padded rows / padded lanes and go back to PyTorch NCHW.
    out = out.reshape(N, 2 * H_pad, W, Cs)[:, :2 * H, :, :Cout]
    return jnp.transpose(out, (0, 3, 1, 2))                            # (N, Cout, 2H, W)


def _reference_forward(x_nchw, weight, bias, *, scale_factor=(2, 1), outermost=False):
    """Pure-JAX reference: Upsample(nearest) -> Conv2d(3x3, pad=1) -> ReLU/Sigmoid."""
    sh, sw = int(scale_factor[0]), int(scale_factor[1])
    xu = jnp.repeat(jnp.repeat(x_nchw, sh, axis=2), sw, axis=3)
    y = jax.lax.conv_general_dilated(
        xu, weight, window_strides=(1, 1), padding=((1, 1), (1, 1)),
        dimension_numbers=("NCHW", "OIHW", "NCHW"))
    y = y + bias[None, :, None, None]
    return jax.nn.sigmoid(y) if outermost else jnp.maximum(y, 0.0)


if __name__ == "__main__":
    key = jax.random.PRNGKey(0)
    k1, k2, k3, k4, k5, k6 = jax.random.split(key, 6)

    # --- Test 1: module-default path (ReLU), small channels -> single-matmul path ---
    N, ch_in, ch_out, H, W = 2, 4, 8, 16, 16
    x = jax.random.normal(k1, (N, ch_in, H, W), dtype=jnp.float32)
    w = jax.random.normal(k2, (ch_out, ch_in, 3, 3), dtype=jnp.float32) / jnp.sqrt(9.0 * ch_in)
    b = 0.1 * jax.random.normal(k3, (ch_out,), dtype=jnp.float32)

    fwd = jax.jit(functools.partial(up_conv_forward, scale_factor=(2, 1), outermost=False))
    y = jax.block_until_ready(fwd(x, w, b))
    y_ref = _reference_forward(x, w, b, outermost=False)
    assert y.shape == (N, ch_out, 2 * H, W), y.shape
    err = float(jnp.max(jnp.abs(y - y_ref)))
    assert jnp.allclose(y, y_ref, atol=5e-2, rtol=5e-2), err    # bf16-operand tolerance

    # --- Test 2: outermost (Sigmoid), wider channels -> fused 3-matmul path, odd H, N=1 ---
    N2, ci2, co2, H2, W2 = 1, 32, 72, 7, 16
    x2 = jax.random.normal(k4, (N2, ci2, H2, W2), dtype=jnp.float32)
    w2 = jax.random.normal(k5, (co2, ci2, 3, 3), dtype=jnp.float32) / jnp.sqrt(9.0 * ci2)
    b2 = 0.1 * jax.random.normal(k6, (co2,), dtype=jnp.float32)

    fwd2 = jax.jit(functools.partial(up_conv_forward, scale_factor=(2, 1), outermost=True))
    y2 = jax.block_until_ready(fwd2(x2, w2, b2))
    y2_ref = _reference_forward(x2, w2, b2, outermost=True)
    assert y2.shape == (N2, co2, 2 * H2, W2), y2.shape
    err2 = float(jnp.max(jnp.abs(y2 - y2_ref)))
    assert jnp.allclose(y2, y2_ref, atol=5e-2, rtol=5e-2), err2

    print("KERNEL_OK")
</pallas_src>

<mosaic_0001>
module attributes {stable_mosaic.version = 11 : i64} {
  func.func @kernel(%arg0: i32, %arg1: i32, %arg2: memref<1x16x18x4xbf16, #tpu.memory_space<vmem>>, %arg3: memref<1x2x18x4xbf16, #tpu.memory_space<vmem>>, %arg4: memref<36x256xbf16, #tpu.memory_space<vmem>>, %arg5: memref<1x128xf32, #tpu.memory_space<vmem>>, %arg6: memref<1x16x2x16x8xf32, #tpu.memory_space<vmem>>) attributes {dimension_semantics = [#tpu.dimension_semantics<parallel>, #tpu.dimension_semantics<parallel>], iteration_bounds = array<i64: 2, 1>, scalar_prefetch = 0 : i64, scratch_operands = 0 : i64, tpu.core_type = #tpu.core_type<tc>, window_params = [{transform_indices = @transform_0, window_bounds = array<i64: 1, 16, 18, 4>}, {transform_indices = @transform_1, window_bounds = array<i64: 1, 2, 18, 4>}, {pipeline_mode = #tpu.pipeline_mode<synchronous>, transform_indices = @transform_2, window_bounds = array<i64: 36, 256>}, {pipeline_mode = #tpu.pipeline_mode<synchronous>, transform_indices = @transform_3, window_bounds = array<i64: 1, 128>}, {transform_indices = @transform_4, window_bounds = array<i64: 1, 16, 2, 16, 8>}]} {
    %c0 = arith.constant 0 : index
    %c0_0 = arith.constant 0 : index
    %c0_1 = arith.constant 0 : index
    %c0_2 = arith.constant 0 : index
    %0 = vector.load %arg2[%c0, %c0_0, %c0_1, %c0_2] : memref<1x16x18x4xbf16, #tpu.memory_space<vmem>>, vector<1x16x18x4xbf16>
    %1 = vector.shape_cast %0 : vector<1x16x18x4xbf16> to vector<16x18x4xbf16>
    %c0_3 = arith.constant 0 : index
    %c0_4 = arith.constant 0 : index
    %c0_5 = arith.constant 0 : index
    %c0_6 = arith.constant 0 : index
    %2 = vector.load %arg3[%c0_3, %c0_4, %c0_5, %c0_6] : memref<1x2x18x4xbf16, #tpu.memory_space<vmem>>, vector<1x2x18x4xbf16>
    %3 = vector.shape_cast %2 : vector<1x2x18x4xbf16> to vector<2x18x4xbf16>
    %4 = tpu.concatenate %1, %3 in 0 : vector<16x18x4xbf16>, vector<2x18x4xbf16> -> vector<18x18x4xbf16>
    %5 = vector.extract_strided_slice %4 {offsets = [0, 0, 0], sizes = [18, 16, 4], strides = [1, 1, 1]} : vector<18x18x4xbf16> to vector<18x16x4xbf16>
    %6 = vector.extract_strided_slice %4 {offsets = [0, 1, 0], sizes = [18, 16, 4], strides = [1, 1, 1]} : vector<18x18x4xbf16> to vector<18x16x4xbf16>
    %7 = vector.extract_strided_slice %4 {offsets = [0, 2, 0], sizes = [18, 16, 4], strides = [1, 1, 1]} : vector<18x18x4xbf16> to vector<18x16x4xbf16>
    %8 = tpu.concatenate %5, %6, %7 in 2 : vector<18x16x4xbf16>, vector<18x16x4xbf16>, vector<18x16x4xbf16> -> vector<18x16x12xbf16>
    %c0_7 = arith.constant 0 : index
    %c0_8 = arith.constant 0 : index
    %9 = vector.load %arg5[%c0_7, %c0_8] : memref<1x128xf32, #tpu.memory_space<vmem>>, vector<1x128xf32>
    %10 = vector.extract_strided_slice %8 {offsets = [0, 0, 0], sizes = [16, 16, 12], strides = [1, 1, 1]} : vector<18x16x12xbf16> to vector<16x16x12xbf16>
    %11 = vector.extract_strided_slice %8 {offsets = [1, 0, 0], sizes = [16, 16, 12], strides = [1, 1, 1]} : vector<18x16x12xbf16> to vector<16x16x12xbf16>
    %12 = vector.extract_strided_slice %8 {offsets = [2, 0, 0], sizes = [16, 16, 12], strides = [1, 1, 1]} : vector<18x16x12xbf16> to vector<16x16x12xbf16>
    %13 = tpu.concatenate %10, %11, %12 in 2 : vector<16x16x12xbf16>, vector<16x16x12xbf16>, vector<16x16x12xbf16> -> vector<16x16x36xbf16>
    %14 = vector.shape_cast %13 : vector<16x16x36xbf16> to vector<256x36xbf16>
    %c0_9 = arith.constant 0 : index
    %c0_10 = arith.constant 0 : index
    %15 = vector.load %arg4[%c0_9, %c0_10] : memref<36x256xbf16, #tpu.memory_space<vmem>>, vector<36x256xbf16>
    %cst = arith.constant dense<0.000000e+00> : vector<256x256xf32>
    %16 = tpu.matmul %14, %15, %cst {dimension_numbers = #tpu.dot_dimension_numbers<[1], [0], [0], [1], [0, 0, 1, 1], [], []>} : vector<256x36xbf16>, vector<36x256xbf16>, vector<256x256xf32> -> vector<256x256xf32>
    %17 = vector.extract_strided_slice %16 {offsets = [0, 0], sizes = [256, 128], strides = [1, 1]} : vector<256x256xf32> to vector<256x128xf32>
    %18 = vector.broadcast %9 : vector<1x128xf32> to vector<256x128xf32>
    %19 = arith.addf %17, %18 : vector<256x128xf32>
    %cst_11 = arith.constant 0.000000e+00 : f32
    %20 = vector.broadcast %cst_11 : f32 to vector<256x128xf32>
    %21 = arith.maximumf %19, %20 : vector<256x128xf32>
    %22 = vector.extract_strided_slice %21 {offsets = [0, 0], sizes = [256, 8], strides = [1, 1]} : vector<256x128xf32> to vector<256x8xf32>
    %23 = vector.shape_cast %22 : vector<256x8xf32> to vector<16x16x8xf32>
    %c0_12 = arith.constant 0 : index
    %c0_13 = arith.constant 0 : index
    %c0_14 = arith.constant 0 : index
    %c0_15 = arith.constant 0 : index
    %c0_16 = arith.constant 0 : index
    %24 = vector.load %arg6[%c0_12, %c0_13, %c0_14, %c0_15, %c0_16] : memref<1x16x2x16x8xf32, #tpu.memory_space<vmem>>, vector<1x16x1x16x8xf32>
    %25 = vector.shape_cast %24 : vector<1x16x1x16x8xf32> to vector<16x16x8xf32>
    %26 = vector.shape_cast %23 : vector<16x16x8xf32> to vector<1x16x1x16x8xf32>
    tpu.vector_store %arg6[%c0_12, %c0_13, %c0_14, %c0_15, %c0_16], %26 {strides = array<i32>} : memref<1x16x2x16x8xf32, #tpu.memory_space<vmem>>, vector<1x16x1x16x8xf32>,
    %27 = vector.extract_strided_slice %16 {offsets = [0, 128], sizes = [256, 128], strides = [1, 1]} : vector<256x256xf32> to vector<256x128xf32>
    %28 = vector.broadcast %9 : vector<1x128xf32> to vector<256x128xf32>
    %29 = arith.addf %27, %28 : vector<256x128xf32>
    %cst_17 = arith.constant 0.000000e+00 : f32
    %30 = vector.broadcast %cst_17 : f32 to vector<256x128xf32>
    %31 = arith.maximumf %29, %30 : vector<256x128xf32>
    %32 = vector.extract_strided_slice %31 {offsets = [0, 0], sizes = [256, 8], strides = [1, 1]} : vector<256x128xf32> to vector<256x8xf32>
    %33 = vector.shape_cast %32 : vector<256x8xf32> to vector<16x16x8xf32>
    %c0_18 = arith.constant 0 : index
    %c0_19 = arith.constant 0 : index
    %c1 = arith.constant 1 : index
    %c0_20 = arith.constant 0 : index
    %c0_21 = arith.constant 0 : index
    %34 = vector.load %arg6[%c0_18, %c0_19, %c1, %c0_20, %c0_21] : memref<1x16x2x16x8xf32, #tpu.memory_space<vmem>>, vector<1x16x1x16x8xf32>
    %35 = vector.shape_cast %34 : vector<1x16x1x16x8xf32> to vector<16x16x8xf32>
    %36 = vector.shape_cast %33 : vector<16x16x8xf32> to vector<1x16x1x16x8xf32>
    tpu.vector_store %arg6[%c0_18, %c0_19, %c1, %c0_20, %c0_21], %36 {strides = array<i32>} : memref<1x16x2x16x8xf32, #tpu.memory_space<vmem>>, vector<1x16x1x16x8xf32>,
    return
  }
  func.func @transform_0(%arg0: i32, %arg1: i32) -> (i32, i32, i32, i32) {
    %c0_i32 = arith.constant 0 : i32
    %c0_i32_0 = arith.constant 0 : i32
    %c0_i32_1 = arith.constant 0 : i32
    return %arg0, %arg1, %c0_i32, %c0_i32_0 : i32, i32, i32, i32
  }
  func.func @transform_1(%arg0: i32, %arg1: i32) -> (i32, i32, i32, i32) {
    %c1_i32 = arith.constant 1 : i32
    %0 = arith.addi %arg1, %c1_i32 : i32
    %c8_i32 = arith.constant 8 : i32
    %1 = arith.muli %0, %c8_i32 : i32
    %c0_i32 = arith.constant 0 : i32
    %c0_i32_0 = arith.constant 0 : i32
    %c0_i32_1 = arith.constant 0 : i32
    return %arg0, %1, %c0_i32, %c0_i32_0 : i32, i32, i32, i32
  }
  func.func @transform_2(%arg0: i32, %arg1: i32) -> (i32, i32) {
    %c0_i32 = arith.constant 0 : i32
    %c0_i32_0 = arith.constant 0 : i32
    %c0_i32_1 = arith.constant 0 : i32
    return %c0_i32, %c0_i32_0 : i32, i32
  }
  func.func @transform_3(%arg0: i32, %arg1: i32) -> (i32, i32) {
    %c0_i32 = arith.constant 0 : i32
    %c0_i32_0 = arith.constant 0 : i32
    %c0_i32_1 = arith.constant 0 : i32
    return %c0_i32, %c0_i32_0 : i32, i32
  }
  func.func @transform_4(%arg0: i32, %arg1: i32) -> (i32, i32, i32, i32, i32) {
    %c0_i32 = arith.constant 0 : i32
    %c0_i32_0 = arith.constant 0 : i32
    %c0_i32_1 = arith.constant 0 : i32
    %c0_i32_2 = arith.constant 0 : i32
    return %arg0, %arg1, %c0_i32, %c0_i32_0, %c0_i32_1 : i32, i32, i32, i32, i32
  }
}

</mosaic_0001>

<bundles_post_ra>
// kernel: up_conv_forward.1
= control target key start
LH: loop header
LB: loop body
LE: loop exit
PB: predicated region body
PF: predicated region fallthrough
CT: control target
= control target key end

     0   :  { %s1906_s15 = smov 0   ;;  %s1908_s16 = smov 0   ;;  %s2593_s0 = inlined_call_operand.vmem [shape: bf16[2,18,18,4], index: 0, kind: input, shape index: {}, may-alias: {0,1}]   ;;  %s2594_s1 = inlined_call_operand.vmem [shape: bf16[2,18,18,4], index: 1, kind: input, shape index: {}, may-alias: {0,1}]   ;;  %s2595_s2 = inlined_call_operand.vmem [shape: bf16[36,256], index: 2, kind: input, shape index: {}]   ;;  %s2596_s3 = inlined_call_operand.vmem [shape: f32[1,128], index: 3, kind: input, shape index: {}]   ;;  %s2597_s4 = inlined_call_operand.vmem [shape: f32[2,16,2,16,8], index: 4, kind: output, shape index: {}]  }
   0x1   :  { %s1910_s17 = smov 0  }
   0x2 LB: > { %s26_s18 = sadd.s32 1, %s1870_s16  ;;  %p1668_p0 = scmp.ge.s32.totalorder %s1874_s17, 1  ;;  %s1874_s17 = sphi %s1910_s17, %s14_s17   ;;  %s1870_s16 = sphi %s1908_s16, %s2599_s16   ;;  %s1866_s15 = sphi %s1906_s15, %s2598_s15  }
   0x3   : > { %p28_p1 = scmp.ge.s32.totalorder %s26_s18, 2  ;;  %p220_p2 = scmp.lt.s32.totalorder %s1874_s17, 3 }
   0x5   : > { %s2601_s18 = smov (%p28_p1, %s26_s18), 0  ;;  %p221_p3 = pnand %p1668_p0, %p220_p2 }
   0x6   : > { %p279_p4 = scmp.lt.s32.totalorder (!%p221_p3), %s1866_s15, 1  ;;  %vm772_vm0 = vcmask (!%p221_p3), 1046528   ;;  %vm519_vm1 = vsmask.f32 (!%p221_p3), 7424  ;;  %s1876_s23 = smov (!%p221_p3), 8   ;;  %vm1148_vm2 = vcmask (!%p221_p3), 1041408  }
   0x7   : > { %224 = sbr.rel (%p221_p3) target bundleno = 548 (0x224), region = 36  ;;  %s1877_s24 = smov (!%p221_p3), 4   ;;  %vm863_vm3 = vcmask (!%p221_p3), 31744   ;;  %vm900_vm4 = vcmask (!%p221_p3), 64512   ;;  %vm1019_vm5 = vcmask (!%p221_p3), 97280   ;;  %vm1052_vm6 = vcmask (!%p221_p3), 195584  }
   0x8   : > { %s1879_s13 = smov (!%p221_p3), 12   ;;  %s1880_s14 = smov (!%p221_p3), 24   ;;  %vm1115_vm7 = vcmask (!%p221_p3), 293888  }
   0xe   : > { %s2603_s15 = smov (!%p279_p4, %s1866_s15), 1 }
   0xf   : > { %s1776_s19 = smul.u32 216, %s2603_s15  ;;  %s1769_s21 = sshll.u32 %s2603_s15, 9 }
  0x11   : > { %s1932_s22 = scalar_lea.vmem %s2593_s0, %s1776_s19  ;;  %s1768_s25 = sadd.s32 192, %s1776_s19 }
  0x12   : > { %v1935_v0 = vld [vmem:[%s1932_s22 + $0x6c] sm:$0xff]   ;;  %v1809_v1 = vld [vmem:[%s1932_s22 + $0x74] ss:$0 sps:$4 sm:$0x11]   ;;  %v1944_v6 = vld [vmem:[%s1932_s22 + $0x78] sm:$0xff]   ;;  %s2073_s28 = scalar_lea.vmem %s2594_s1, %s1768_s25 }
  0x13   : > { %v1939_v2 = vld [vmem:[%s1932_s22 + $0xc] sm:$0xff]   ;;  %v800_v3 = vrot.slane %v1935_v0, 1  ;;  %v801_v4 = vrot.slane %v1809_v1, 1  ;;  %v1811_v5 = vld [vmem:[%s1932_s22 + $0x14] ss:$0 sps:$4 sm:$0x11]  }
  0x14   : > { %v776_v7 = vrot.slane %v1939_v2, 1  ;;  %v1948_v8 = vld [vmem:[%s1932_s22 + $0x18] sm:$0xff]   ;;  %v777_v10 = vrot.slane %v1811_v5, 1  ;;  %v1813_v11 = vld [vmem:[%s1932_s22 + $0x80] ss:$0 sps:$4 sm:$0x11]  }
  0x15   : > { %v802_v9 = vsel %vm772_vm0, %v800_v3, %v801_v4  ;;  %v803_v12 = vrot.slane %v1944_v6, 1  ;;  %v779_v13 = vrot.slane %v1948_v8, 1  ;;  %v804_v15 = vrot.slane %v1813_v11, 1  ;;  %v1815_v16 = vld [vmem:[%s1932_s22 + $0x20] ss:$0 sps:$4 sm:$0x11]  }
  0x16   : > { %845 = vrot.lane.b32.xlu1 %v802_v9, %s1876_s23  ;;  %v778_v14 = vsel %vm772_vm0, %v776_v7, %v777_v10  ;;  %v545_v17 = vshrl.u32 %v1948_v8, 16  ;;  %v547_v18 = vshll.u32 %v1948_v8, 16  ;;  %v533_v19 = vshrl.u32 %v1939_v2, 16  ;;  %v1964_v25 = vld [vmem:[%s1932_s22 + $0x24] sm:$0xff]   ;;  %v1989_v57 = vld [vmem:[%s1932_s22 + $0x30] sm:$0xff]  }
  0x17   : > { %829 = vrot.lane.b32.xlu0 %v778_v14, %s1876_s23  ;;  %v535_v20 = vshll.u32 %v1939_v2, 16  ;;  %v805_v21 = vsel %vm772_vm0, %v803_v12, %v804_v15  ;;  %v780_v22 = vrot.slane %v1815_v16, 1  ;;  %v552_v23 = vshll.u32 %v1815_v16, 16  ;;  %v1817_v34 = vld [vmem:[%s1932_s22 + $0x2c] ss:$0 sps:$4 sm:$0x11]  }
  0x18   : > { %v540_v24 = vshll.u32 %v1811_v5, 16  ;;  %v549_v26 = vrot.slane %v547_v18, 1  ;;  %v641_v28 = vshrl.u32 %v1944_v6, 16  ;;  %v643_v29 = vshll.u32 %v1944_v6, 16  ;;  %v1979_v47 = vld [vmem:[%s1932_s22 + $0x84] sm:$0xff]   ;;  %v1992_v62 = vld [vmem:[%s1932_s22 + $0x90] sm:$0xff]  }
  0x19   : > { %v537_v27 = vrot.slane %v535_v20, 1  ;;  %v781_v30 = vsel %vm772_vm0, %v779_v13, %v780_v22  ;;  %v554_v31 = vrot.slane %v552_v23, 1  ;;  %v648_v33 = vshll.u32 %v1813_v11, 16  ;;  %v1819_v48 = vld [vmem:[%s1932_s22 + $0x8c] ss:$0 sps:$4 sm:$0x11]  }
  0x1a   : > { %847 = vrot.lane.b32.xlu1 %v805_v21, %s1876_s23  ;;  %v542_v32 = vrot.slane %v540_v24, 1  ;;  %v550_v35 = vor.u32 %v549_v26, %v545_v17  ;;  %v645_v37 = vrot.slane %v643_v29, 1  ;;  %v629_v38 = vshrl.u32 %v1935_v0, 16  ;;  %v1821_v5 = vld [vmem:[%s1932_s22 + $0x38] ss:$0 sps:$4 sm:$0x11]  }
  0x1b   : > { %831 = vrot.lane.b32.xlu0 %v781_v30, %s1876_s23  ;;  %v538_v36 = vor.u32 %v537_v27, %v533_v19  ;;  %v650_v39 = vrot.slane %v648_v33, 1  ;;  %v631_v40 = vshll.u32 %v1935_v0, 16  ;;  %v636_v41 = vshll.u32 %v1809_v1, 16  ;;  %v1823_v13 = vld [vmem:[%s1932_s22 + $0x98] ss:$0 sps:$4 sm:$0x11]  }
  0x1c   : > { %v557_v42 = vshrl.u32 %v1964_v25, 16  ;;  %v555_v43 = vsel %vm519_vm1, %v550_v35, %v554_v31  ;;  %v646_v45 = vor.u32 %v645_v37, %v641_v28  ;;  %v559_v46 = vshll.u32 %v1964_v25, 16  ;;  %v2006_v18 = vld [vmem:[%s1932_s22 + $0x3c] sm:$0xff]   ;;  %v1825_v28 = vld [vmem:[%s1932_s22 + $0x44] ss:$0 sps:$4 sm:$0x11]  }
  0x1d   : > { %v543_v44 = vsel %vm519_vm1, %v538_v36, %v542_v32  ;;  %v633_v49 = vrot.slane %v631_v40, 1  ;;  %v638_v50 = vrot.slane %v636_v41, 1  ;;  %v564_v51 = vshll.u32 %v1817_v34, 16  ;;  %v2011_v23 = vld [vmem:[%s1932_s22 + $0x9c] sm:$0xff]  }
  0x1e   : > { %740 = vrot.lane.b32.xlu1 %v555_v43, %s1877_s24  ;;  %v782_v52 = vrot.slane %v1964_v25, 1  ;;  %v651_v53 = vsel %vm519_vm1, %v646_v45, %v650_v39  ;;  %v561_v54 = vrot.slane %v559_v46, 1  ;;  %v653_v55 = vshrl.u32 %v1979_v47, 16  ;;  %v2027_v43 = vld [vmem:[%s1932_s22 + $0xa8] sm:$0xff]  }
  0x1f   : > { %738 = vrot.lane.b32.xlu0 %v543_v44, %s1877_s24  ;;  %v655_v56 = vshll.u32 %v1979_v47, 16  ;;  %v634_v58 = vor.u32 %v633_v49, %v629_v38  ;;  %v566_v59 = vrot.slane %v564_v51, 1  ;;  %v660_v60 = vshll.u32 %v1819_v48, 16  ;;  %v2032_v49 = vld [vmem:[%s1932_s22 + $0x48] sm:$0xff]  }
  0x20   : > { %v783_v61 = vrot.slane %v1817_v34, 1  ;;  %v562_v63 = vor.u32 %v561_v54, %v557_v42  ;;  %v806_v3 = vrot.slane %v1979_v47, 1  ;;  %v807_v4 = vrot.slane %v1819_v48, 1  ;;  %v1827_v34 = vld [vmem:[%s1932_s22 + $0xa4] ss:$0 sps:$4 sm:$0x11]  }
  0x21   : > { %v657_v1 = vrot.slane %v655_v56, 1  ;;  %v639_v7 = vsel %vm519_vm1, %v634_v58, %v638_v50  ;;  %v662_v9 = vrot.slane %v660_v60, 1  ;;  %v569_v10 = vshrl.u32 %v1989_v57, 16  ;;  %v1831_v54 = vld [vmem:[%s1932_s22 + $0xb0] ss:$0 sps:$4 sm:$0x11]  }
  0x22   : > { %756 = vrot.lane.b32.xlu1 %v651_v53, %s1877_s24  ;;  %v571_v12 = vshll.u32 %v1989_v57, 16  ;;  %v567_v14 = vsel %vm519_vm1, %v562_v63, %v566_v59  ;;  %v576_v15 = vshll.u32 %v1821_v5, 16  ;;  %v665_v16 = vshrl.u32 %v1992_v62, 16  ;;  %v1829_v59 = vld [vmem:[%s1932_s22 + $0x50] ss:$0 sps:$4 sm:$0x11]  }
  0x23   : > { %754 = vrot.lane.b32.xlu0 %v639_v7, %s1877_s24  ;;  %v658_v11 = vor.u32 %v657_v1, %v653_v55  ;;  %v667_v17 = vshll.u32 %v1992_v62, 16  ;;  %v672_v21 = vshll.u32 %v1823_v13, 16  ;;  %v784_v24 = vsel %vm772_vm0, %v782_v52, %v783_v61 }
  0x24   : > { %v573_v20 = vrot.slane %v571_v12, 1  ;;  %v808_v26 = vsel %vm772_vm0, %v806_v3, %v807_v4  ;;  %v578_v30 = vrot.slane %v576_v15, 1  ;;  %v583_v32 = vshll.u32 %v2006_v18, 16  ;;  %v2054_v15 = vld [vmem:[%s1932_s22 + $0x54] sm:$0xff]  }
  0x25   : > { %v663_v19 = vsel %vm519_vm1, %v658_v11, %v662_v9  ;;  %v669_v22 = vrot.slane %v667_v17, 1  ;;  %v674_v27 = vrot.slane %v672_v21, 1  ;;  %v785_v33 = vrot.slane %v1989_v57, 1  ;;  %v2063_v17 = vld [vmem:[%s1932_s22 + $0xbc] ss:$0 sps:$4 sm:$0x11]  }
  0x26   : > { %758 = vrot.lane.b32.xlu1 %v663_v19, %s1877_s24  ;;  %v574_v29 = vor.u32 %v573_v20, %v569_v10  ;;  %v786_v35 = vrot.slane %v1821_v5, 1  ;;  %v809_v36 = vrot.slane %v1992_v62, 1  ;;  %v810_v37 = vrot.slane %v1823_v13, 1  ;;  %v2047_v5 = vld [vmem:[%s1932_s22 + $0xb4] sm:$0xff]  }
  0x27   : > { %742 = vrot.lane.b32.xlu0 %v567_v14, %s1877_s24  ;;  %v670_v31 = vor.u32 %v669_v22, %v665_v16  ;;  %v679_v38 = vshll.u32 %v2011_v23, 16  ;;  %v588_v40 = vshll.u32 %v1825_v28, 16  ;;  %v677_v41 = vshrl.u32 %v2011_v23, 16  ;;  %v2057_v16 = vld [vmem:[%s1932_s22 + $0x5c] ss:$0 sps:$4 sm:$0x11]  }
  0x28   : > { %v684_v42 = vshll.u32 %v1827_v34, 16  ;;  %v579_v44 = vsel %vm519_vm1, %v574_v29, %v578_v30  ;;  %v581_v45 = vshrl.u32 %v2006_v18, 16  ;;  %v585_v46 = vrot.slane %v583_v32, 1 }
  0x29   : > { %v675_v39 = vsel %vm519_vm1, %v670_v31, %v674_v27  ;;  %v681_v48 = vrot.slane %v679_v38, 1  ;;  %v811_v50 = vsel %vm772_vm0, %v809_v36, %v810_v37  ;;  %v590_v51 = vrot.slane %v588_v40, 1  ;;  %v2084_v38 = vld [vmem:[%s1932_s22 + $0x60] sm:$0xff]  }
  0x2a   : > { %849 = vrot.lane.b32.xlu1 %v808_v26, %s1876_s23  ;;  %v686_v53 = vrot.slane %v684_v42, 1  ;;  %v691_v55 = vshll.u32 %v2027_v43, 16  ;;  %v787_v56 = vsel %vm772_vm0, %v785_v33, %v786_v35  ;;  %v586_v58 = vor.u32 %v585_v46, %v581_v45  ;;  %v1839_v46 = vld [vmem:[%s2073_s28 + $0x8] ss:$0 sps:$4 sm:$0x11]  }
  0x2b   : > { %833 = vrot.lane.b32.xlu0 %v784_v24, %s1876_s23  ;;  %v682_v52 = vor.u32 %v681_v48, %v677_v41  ;;  %v595_v60 = vshll.u32 %v2032_v49, 16  ;;  %v788_v61 = vrot.slane %v2006_v18, 1  ;;  %v789_v63 = vrot.slane %v1825_v28, 1 }
  0x2c   : > { %v812_v1 = vrot.slane %v2011_v23, 1  ;;  %v813_v3 = vrot.slane %v1827_v34, 1  ;;  %v689_v4 = vshrl.u32 %v2027_v43, 16  ;;  %v693_v9 = vrot.slane %v691_v55, 1 }
  0x2d   : > { %v687_v7 = vsel %vm519_vm1, %v682_v52, %v686_v53  ;;  %v696_v10 = vshll.u32 %v1831_v54, 16  ;;  %v591_v11 = vsel %vm519_vm1, %v586_v58, %v590_v51  ;;  %v593_v12 = vshrl.u32 %v2032_v49, 16  ;;  %v2097_v52 = vld [vmem:[%s1932_s22] sm:$0xff]   ;;  %v1837_v55 = vld [vmem:[%s1932_s22 + $0x68] ss:$0 sps:$4 sm:$0x11]  }
  0x2e   : > { %760 = vrot.lane.b32.xlu1 %v675_v39, %s1877_s24  ;;  %v597_v13 = vrot.slane %v595_v60, 1  ;;  %v600_v14 = vshll.u32 %v1829_v59, 16  ;;  %v814_v19 = vsel %vm772_vm0, %v812_v1, %v813_v3  ;;  %v694_v20 = vor.u32 %v693_v9, %v689_v4  ;;  %v2087_v39 = vld [vmem:[%s2073_s28] sm:$0xff]  }
  0x2f   : > { %744 = vrot.lane.b32.xlu0 %v579_v44, %s1877_s24  ;;  %v698_v21 = vrot.slane %v696_v10, 1  ;;  %v703_v22 = vshll.u32 %v2047_v5, 16  ;;  %v790_v24 = vsel %vm772_vm0, %v788_v61, %v789_v63  ;;  %v607_v28 = vshll.u32 %v2054_v15, 16 }
  0x30   : > { %v598_v26 = vor.u32 %v597_v13, %v593_v12  ;;  %v602_v27 = vrot.slane %v600_v14, 1  ;;  %v791_v29 = vrot.slane %v2032_v49, 1  ;;  %v792_v30 = vrot.slane %v1829_v59, 1  ;;  %v1843_v59 = vld [vmem:[%s1932_s22 + $0x8] ss:$0 sps:$4 sm:$0x11]  }
  0x31   : > { %v815_v31 = vrot.slane %v2027_v43, 1  ;;  %v612_v32 = vshll.u32 %v2057_v16, 16  ;;  %v708_v33 = vshll.u32 %v2063_v17, 16  ;;  %v699_v34 = vsel %vm519_vm1, %v694_v20, %v698_v21 }
  0x32   : > { %851 = vrot.lane.b32.xlu1 %v811_v50, %s1876_s23  ;;  %v816_v35 = vrot.slane %v1831_v54, 1  ;;  %v701_v36 = vshrl.u32 %v2047_v5, 16  ;;  %v705_v37 = vrot.slane %v703_v22, 1  ;;  %v603_v40 = vsel %vm519_vm1, %v598_v26, %v602_v27 }
  0x33   : > { %835 = vrot.lane.b32.xlu0 %v787_v56, %s1876_s23  ;;  %v605_v41 = vshrl.u32 %v2054_v15, 16  ;;  %v609_v42 = vrot.slane %v607_v28, 1  ;;  %v614_v44 = vrot.slane %v612_v32, 1  ;;  %v710_v45 = vrot.slane %v708_v33, 1 }
  0x34   : > { %v817_v48 = vsel %vm772_vm0, %v815_v31, %v816_v35  ;;  %v706_v50 = vor.u32 %v705_v37, %v701_v36  ;;  %v715_v51 = vshll.u32 %v2087_v39, 16  ;;  %v793_v53 = vsel %vm772_vm0, %v791_v29, %v792_v30  ;;  %v1841_v28 = vld [vmem:[%s2073_s28 + $0x14] ss:$0 sps:$4 sm:$0x11]  }
  0x35   : > { %v610_v54 = vor.u32 %v609_v42, %v605_v41  ;;  %v619_v56 = vshll.u32 %v2084_v38, 16  ;;  %v794_v58 = vrot.slane %v2054_v15, 1  ;;  %v773_v60 = vrot.slane %v2097_v52, 1 }
  0x36   : > { %762 = vrot.lane.b32.xlu1 %v687_v7, %s1877_s24  ;;  %v795_v61 = vrot.slane %v2057_v16, 1  ;;  %v818_v63 = vrot.slane %v2047_v5, 1  ;;  %v819_v1 = vrot.slane %v2063_v17, 1  ;;  %v713_v3 = vshrl.u32 %v2087_v39, 16  ;;  %v2115_v16 = vld [vmem:[%s2073_s28 + $0xc] sm:$0xff]  }
  0x37   : > { %746 = vrot.lane.b32.xlu0 %v591_v11, %s1877_s24  ;;  %v711_v4 = vsel %vm519_vm1, %v706_v50, %v710_v45  ;;  %v717_v7 = vrot.slane %v715_v51, 1  ;;  %v720_v9 = vshll.u32 %v1839_v46, 16  ;;  %v774_v10 = vrot.slane %v1843_v59, 1 }
  0x38   : > { %v615_v11 = vsel %vm519_vm1, %v610_v54, %v614_v44  ;;  %v617_v12 = vshrl.u32 %v2084_v38, 16  ;;  %v621_v13 = vrot.slane %v619_v56, 1  ;;  %v624_v14 = vshll.u32 %v1837_v55, 16 }
  0x39   : > { %v775_v17 = vsel %vm772_vm0, %v773_v60, %v774_v10  ;;  %v718_v20 = vor.u32 %v717_v7, %v713_v3  ;;  %v722_v21 = vrot.slane %v720_v9, 1  ;;  %v523_v22 = vshll.u32 %v2097_v52, 16  ;;  %v1846_v60 = vld [vmem:[%s2595_s2] ss:$8 sps:$4 sm:$0xff]  }
  0x3a   : > { %853 = vrot.lane.b32.xlu1 %v814_v19, %s1876_s23  ;;  %v820_v19 = vsel %vm772_vm0, %v818_v63, %v819_v1  ;;  %v622_v26 = vor.u32 %v621_v13, %v617_v12  ;;  %v626_v27 = vrot.slane %v624_v14, 1  ;;  %v727_v29 = vshll.u32 %v2115_v16, 16  ;;  %v1849_v63 = vld [vmem:[%s2595_s2 + $0x10] ss:$8 sps:$4 sm:$0xff]   ;;  %v1089_v3 = vld [vmem:[%s2595_s2 + $0x20] sm:$0x33] }
  0x3b   : > { %837 = vrot.lane.b32.xlu0 %v790_v24, %s1876_s23  ;;  %v796_v24 = vsel %vm772_vm0, %v794_v58, %v795_v61  ;;  %v797_v30 = vrot.slane %v2084_v38, 1  ;;  %v798_v31 = vrot.slane %v1837_v55, 1  ;;  %v821_v32 = vrot.slane %v2087_v39, 1  ;;  %v1847_v61 = vld [vmem:[%s2595_s2 + $0x14] ss:$8 sps:$4 sm:$0xff]  }
  0x3c   : > { %v822_v33 = vrot.slane %v1839_v46, 1  ;;  %v521_v35 = vshrl.u32 %v2097_v52, 16  ;;  %v525_v36 = vrot.slane %v523_v22, 1  ;;  %v528_v37 = vshll.u32 %v1843_v59, 16  ;;  %v1844_v59 = vld [vmem:[%s2595_s2 + $0x4] ss:$8 sps:$4 sm:$0xff]  }
  0x3d   : > { %v725_v41 = vshrl.u32 %v2115_v16, 16  ;;  %v729_v42 = vrot.slane %v727_v29, 1  ;;  %v732_v44 = vshll.u32 %v1841_v28, 16  ;;  %v799_v50 = vsel %vm772_vm0, %v797_v30, %v798_v31  ;;  %1155 = vmatprep.subr.bf16.mxu0 %v1844_v59  ;;  %1770 = vmatprep.subr.bf16.mxu1 %v1844_v59 }
  0x3e   : > { %764 = vrot.lane.b32.xlu1 %v699_v34, %s1877_s24  ;;  %v723_v34 = vsel %vm519_vm1, %v718_v20, %v722_v21  ;;  %v823_v45 = vsel %vm772_vm0, %v821_v32, %v822_v33  ;;  %v526_v46 = vor.u32 %v525_v36, %v521_v35  ;;  %v824_v54 = vrot.slane %v2115_v16, 1  ;;  %1156 = vmatpush1.bf16.msra.mxu0 %v1846_v60 }
  0x3f   : > { %748 = vrot.lane.b32.xlu0 %v603_v40, %s1877_s24  ;;  %v627_v40 = vsel %vm519_vm1, %v622_v26, %v626_v27  ;;  %v730_v51 = vor.u32 %v729_v42, %v725_v41  ;;  %v825_v55 = vrot.slane %v1841_v28, 1  ;;  %1157 = vmatprep.subr.bf16.mxu0 %v1847_v61  ;;  %v1713_v7 = vcombine.low %v1089_v3, %v1089_v3 }
  0x40   : > { %1773 = vmatpush1.bf16.msra.mxu1 %v1846_v60  ;;  %v1878_v13 = vmov 0  }
  0x41   : > { %v826_v1 = vsel %vm772_vm0, %v824_v54, %v825_v55  ;;  %1771 = vmatprep.subr.bf16.mxu1 %v1847_v61  ;;  %v1150_v10 = vsel %vm1148_vm2, %v1713_v7, 0  ;;  %1187 = vmatprep.mubr.bf16.mxu0 %v1878_v13 }
  0x42   : > { %855 = vrot.lane.b32.xlu1 %v817_v48, %s1876_s23  ;;  %v530_v48 = vrot.slane %v528_v37, 1  ;;  %1158 = vmatpush1.bf16.msra.mxu0 %v1849_v63 }
  0x43   : > { %839 = vrot.lane.b32.xlu0 %v793_v53, %s1876_s23  ;;  %v734_v53 = vrot.slane %v732_v44, 1  ;;  %1267 = vmatprep.mubr.bf16.mxu1 %v1878_v13 }
  0x44   : > { %v531_v56 = vsel %vm519_vm1, %v526_v46, %v530_v48  ;;  %1774 = vmatpush1.bf16.msra.mxu1 %v1849_v63 }
  0x45   : > { %v735_v58 = vsel %vm519_vm1, %v730_v51, %v734_v53 }
  0x46   : > { %766 = vrot.lane.b32.xlu1 %v711_v4, %s1877_s24  ;;  %v1714_v4 = vcombine.high %v1089_v3, %v1089_v3 }
  0x47   : > { %750 = vrot.lane.b32.xlu0 %v615_v11, %s1877_s24 }
  0x48   : > { %1715 = vmatprep.subr.msk.bf16.mxu0 %vm1148_vm2, %v1714_v4  ;;  %1772 = vmatprep.subr.msk.bf16.mxu1 %vm1148_vm2, %v1714_v4 }
  0x49   : > { %1160 = vmatpush1.bf16.msra.mxu0 %v1150_v10  ;;  %1775 = vmatpush1.bf16.msra.mxu1 %v1150_v10 }
  0x4a   : > { %857 = vrot.lane.b32.xlu1 %v820_v19, %s1876_s23 }
  0x4b   : > { %841 = vrot.lane.b32.xlu0 %v796_v24, %s1876_s23 }
  0x4e   : > { %768 = vrot.lane.b32.xlu1 %v723_v34, %s1877_s24 }
  0x4f   : > { %752 = vrot.lane.b32.xlu0 %v627_v40, %s1877_s24 }
  0x52   : > { %859 = vrot.lane.b32.xlu1 %v823_v45, %s1876_s23 }
  0x53   : > { %843 = vrot.lane.b32.xlu0 %v799_v50, %s1876_s23 }
  0x56   : > { %736 = vrot.lane.b32.xlu1 %v531_v56, %s1877_s24 }
  0x57   : > { %770 = vrot.lane.b32.xlu0 %v735_v58, %s1877_s24  ;;  %s2391_s24 = scalar_lea.vmem %s2597_s4, %s1769_s21 }
  0x5a   : > { %827 = vrot.lane.b32.xlu1 %v775_v17, %s1876_s23 }
  0x5b   : > { %861 = vrot.lane.b32.xlu0 %v826_v1, %s1876_s23 }
  0x88   : > { %v846_v9 = vpop.permute.xlu1 %845 }
  0x89   : > { %v830_v11 = vpop.permute.xlu0 %829 }
  0x8c   : > { %v848_v12 = vpop.permute.xlu1 %847 }
  0x8d   : > { %v832_v14 = vpop.permute.xlu0 %831 }
  0x90   : > { %v741_v17 = vpop.permute.xlu1 %740 }
  0x91   : > { %v739_v19 = vpop.permute.xlu0 %738  ;;  %v869_v22 = vsel %vm863_vm3, %v1948_v8, %v741_v17 }
  0x92   : > { %v867_v20 = vsel %vm863_vm3, %v1939_v2, %v739_v19  ;;  %v2176_v28 = vsel %vm900_vm4, %v869_v22, %v832_v14 }
  0x93   : > { %v2167_v21 = vsel %vm900_vm4, %v867_v20, %v830_v11 }
  0x94   : > { %954 = vrot.lane.b32.xlu0 %v2167_v21, %s1879_s13  ;;  %v757_v24 = vpop.permute.xlu1 %756 }
  0x95   : > { %v755_v26 = vpop.permute.xlu0 %754  ;;  %v885_v29 = vsel %vm863_vm3, %v1944_v6, %v757_v24 }
  0x96   : > { %v883_v27 = vsel %vm863_vm3, %v1935_v0, %v755_v26  ;;  %v2190_v31 = vsel %vm900_vm4, %v885_v29, %v848_v12 }
  0x97   : > { %v2179_v2 = vsel %vm900_vm4, %v883_v27, %v846_v9 }
  0x98   : > { %987 = vrot.lane.b32.xlu0 %v2176_v28, %s1880_s14  ;;  %970 = vrot.lane.b32.xlu1 %v2179_v2, %s1879_s13  ;;  %v759_v8 = vpop.permute.xlu1 %758 }
  0x99   : > { %v743_v30 = vpop.permute.xlu0 %742  ;;  %v887_v34 = vsel %vm863_vm3, %v1979_v47, %v759_v8 }
  0x9a   : > { %v871_v0 = vsel %vm863_vm3, %v1964_v25, %v743_v30 }
  0x9c   : > { %956 = vrot.lane.b32.xlu0 %v2176_v28, %s1879_s13  ;;  %1003 = vrot.lane.b32.xlu1 %v2190_v31, %s1880_s14  ;;  %v850_v6 = vpop.permute.xlu1 %849 }
  0x9d   : > { %v834_v32 = vpop.permute.xlu0 %833  ;;  %v2208_v37 = vsel %vm900_vm4, %v887_v34, %v850_v6 }
  0x9e   : > { %v2197_v33 = vsel %vm900_vm4, %v871_v0, %v834_v32 }
  0xa0   : > { %989 = vrot.lane.b32.xlu0 %v2197_v33, %s1880_s14  ;;  %972 = vrot.lane.b32.xlu1 %v2190_v31, %s1879_s13  ;;  %v761_v25 = vpop.permute.xlu1 %760 }
  0xa1   : > { %v745_v35 = vpop.permute.xlu0 %744  ;;  %v889_v42 = vsel %vm863_vm3, %v1992_v62, %v761_v25 }
  0xa2   : > { %v873_v36 = vsel %vm863_vm3, %v1989_v57, %v745_v35 }
  0xa4   : > { %958 = vrot.lane.b32.xlu0 %v2197_v33, %s1879_s13  ;;  %1005 = vrot.lane.b32.xlu1 %v2208_v37, %s1880_s14  ;;  %v852_v47 = vpop.permute.xlu1 %851 }
  0xa5   : > { %v836_v40 = vpop.permute.xlu0 %835  ;;  %v2226_v46 = vsel %vm900_vm4, %v889_v42, %v852_v47 }
  0xa6   : > { %v2215_v41 = vsel %vm900_vm4, %v873_v36, %v836_v40 }
  0xa8   : > { %991 = vrot.lane.b32.xlu0 %v2215_v41, %s1880_s14  ;;  %974 = vrot.lane.b32.xlu1 %v2208_v37, %s1879_s13  ;;  %v763_v57 = vpop.permute.xlu1 %762 }
  0xa9   : > { %v747_v44 = vpop.permute.xlu0 %746  ;;  %v891_v51 = vsel %vm863_vm3, %v2011_v23, %v763_v57 }
  0xaa   : > { %v875_v45 = vsel %vm863_vm3, %v2006_v18, %v747_v44 }
  0xac   : > { %960 = vrot.lane.b32.xlu0 %v2215_v41, %s1879_s13  ;;  %1007 = vrot.lane.b32.xlu1 %v2226_v46, %s1880_s14  ;;  %v854_v62 = vpop.permute.xlu1 %853 }
  0xad   : > { %v838_v48 = vpop.permute.xlu0 %837  ;;  %v2244_v55 = vsel %vm900_vm4, %v891_v51, %v854_v62 }
  0xae   : > { %v2233_v50 = vsel %vm900_vm4, %v875_v45, %v838_v48 }
  0xb0   : > { %993 = vrot.lane.b32.xlu0 %v2233_v50, %s1880_s14  ;;  %976 = vrot.lane.b32.xlu1 %v2226_v46, %s1879_s13  ;;  %v765_v18 = vpop.permute.xlu1 %764 }
  0xb1   : > { %v749_v53 = vpop.permute.xlu0 %748  ;;  %v893_v59 = vsel %vm863_vm3, %v2027_v43, %v765_v18 }
  0xb2   : > { %v877_v54 = vsel %vm863_vm3, %v2032_v49, %v749_v53 }
  0xb4   : > { %962 = vrot.lane.b32.xlu0 %v2233_v50, %s1879_s13  ;;  %1009 = vrot.lane.b32.xlu1 %v2244_v55, %s1880_s14  ;;  %v856_v23 = vpop.permute.xlu1 %855 }
  0xb5   : > { %v840_v56 = vpop.permute.xlu0 %839  ;;  %v2262_v63 = vsel %vm900_vm4, %v893_v59, %v856_v23 }
  0xb6   : > { %v2251_v58 = vsel %vm900_vm4, %v877_v54, %v840_v56 }
  0xb8   : > { %995 = vrot.lane.b32.xlu0 %v2251_v58, %s1880_s14  ;;  %978 = vrot.lane.b32.xlu1 %v2244_v55, %s1879_s13  ;;  %v767_v49 = vpop.permute.xlu1 %766 }
  0xb9   : > { %v751_v60 = vpop.permute.xlu0 %750  ;;  %v895_v4 = vsel %vm863_vm3, %v2047_v5, %v767_v49 }
  0xba   : > { %v879_v61 = vsel %vm863_vm3, %v2054_v15, %v751_v60 }
  0xbc   : > { %964 = vrot.lane.b32.xlu0 %v2251_v58, %s1879_s13  ;;  %1011 = vrot.lane.b32.xlu1 %v2262_v63, %s1880_s14  ;;  %v858_v43 = vpop.permute.xlu1 %857 }
  0xbd   : > { %v842_v1 = vpop.permute.xlu0 %841  ;;  %v2280_v10 = vsel %vm900_vm4, %v895_v4, %v858_v43 }
  0xbe   : > { %v2269_v3 = vsel %vm900_vm4, %v879_v61, %v842_v1 }
  0xc0   : > { %997 = vrot.lane.b32.xlu0 %v2269_v3, %s1880_s14  ;;  %980 = vrot.lane.b32.xlu1 %v2262_v63, %s1879_s13  ;;  %v769_v7 = vpop.permute.xlu1 %768 }
  0xc1   : > { %v753_v15 = vpop.permute.xlu0 %752  ;;  %v897_v12 = vsel %vm863_vm3, %v2087_v39, %v769_v7 }
  0xc2   : > { %v881_v9 = vsel %vm863_vm3, %v2084_v38, %v753_v15 }
  0xc4   : > { %966 = vrot.lane.b32.xlu0 %v2269_v3, %s1879_s13  ;;  %1013 = vrot.lane.b32.xlu1 %v2280_v10, %s1880_s14  ;;  %v860_v14 = vpop.permute.xlu1 %859 }
  0xc5   : > { %v844_v5 = vpop.permute.xlu0 %843  ;;  %v934_v17 = vsel %vm900_vm4, %v897_v12, %v860_v14 }
  0xc6   : > { %v918_v11 = vsel %vm900_vm4, %v881_v9, %v844_v5 }
  0xc8   : > { %999 = vrot.lane.b32.xlu0 %v918_v11, %s1880_s14  ;;  %982 = vrot.lane.b32.xlu1 %v2280_v10, %s1879_s13  ;;  %v737_v22 = vpop.permute.xlu1 %736 }
  0xc9   : > { %v771_v38 = vpop.permute.xlu0 %770  ;;  %v865_v24 = vsel %vm863_vm3, %v2097_v52, %v737_v22 }
  0xca   : > { %v899_v19 = vsel %vm863_vm3, %v2115_v16, %v771_v38 }
  0xcc   : > { %968 = vrot.lane.b32.xlu0 %v918_v11, %s1879_s13  ;;  %1015 = vrot.lane.b32.xlu1 %v934_v17, %s1880_s14  ;;  %v828_v26 = vpop.permute.xlu1 %827 }
  0xcd   : > { %v862_v20 = vpop.permute.xlu0 %861  ;;  %v902_v16 = vsel %vm900_vm4, %v865_v24, %v828_v26 }
  0xce   : > { %v936_v39 = vsel %vm900_vm4, %v899_v19, %v862_v20 }
  0xd0   : > { %1001 = vrot.lane.b32.xlu0 %v2179_v2, %s1880_s14  ;;  %984 = vrot.lane.b32.xlu1 %v934_v17, %s1879_s13 }
  0xd4   : > { %1017 = vrot.lane.b32.xlu1 %v936_v39, %s1880_s14 }
 0x106   : > { %v955_v27 = vpop.permute.xlu0 %954 }
 0x107   : > { %v1021_v29 = vsel %vm1019_vm5, %v902_v16, %v955_v27 }
 0x10a   : > { %v988_v8 = vpop.permute.xlu0 %987  ;;  %v971_v30 = vpop.permute.xlu1 %970 }
 0x10b   : > { %v1054_v0 = vsel %vm1052_vm6, %v1021_v29, %v988_v8  ;;  %v1037_v6 = vsel %vm1019_vm5, %v918_v11, %v971_v30 }
 0x10c   : > { %1716 = vmatmul.mubr.msk.bf16.vlgmr.msra.gmra.mrb[0].mxu0 %vm1115_vm7, %v1054_v0 }
 0x10d   : > { %1197 = vmatprep.mubr.bf16.mxu0 %v1878_v13 }
 0x10e   : > { %v957_v52 = vpop.permute.xlu0 %956  ;;  %v1004_v32 = vpop.permute.xlu1 %1003 }
 0x10f   : > { %v1070_v34 = vsel %vm1052_vm6, %v1037_v6, %v1004_v32  ;;  %v1023_v25 = vsel %vm1019_vm5, %v2167_v21, %v957_v52 }
 0x110   : > { %1724 = vmatmul.mubr.msk.bf16.vlgmr.msra.gmra.mrb[0].mxu1 %vm1115_vm7, %v1070_v34 }
 0x111   : > { %1277 = vmatprep.mubr.bf16.mxu1 %v1878_v13 }
 0x112   : > { %v990_v35 = vpop.permute.xlu0 %989  ;;  %v973_v36 = vpop.permute.xlu1 %972 }
 0x113   : > { %v1056_v47 = vsel %vm1052_vm6, %v1023_v25, %v990_v35  ;;  %v1039_v40 = vsel %vm1019_vm5, %v2179_v2, %v973_v36 }
 0x114   : > { %1717 = vmatmul.mubr.msk.bf16.gmra.mrb[4].mxu0 %vm1115_vm7, %v1056_v47 }
 0x115   : > { %1207 = vmatprep.mubr.bf16.mxu0 %v1878_v13 }
 0x116   : > { %v959_v42 = vpop.permute.xlu0 %958  ;;  %v1006_v57 = vpop.permute.xlu1 %1005 }
 0x117   : > { %v1072_v44 = vsel %vm1052_vm6, %v1039_v40, %v1006_v57  ;;  %v1025_v21 = vsel %vm1019_vm5, %v2176_v28, %v959_v42 }
 0x118   : > { %1725 = vmatmul.mubr.msk.bf16.gmra.mrb[4].mxu1 %vm1115_vm7, %v1072_v44 }
 0x119   : > { %1287 = vmatprep.mubr.bf16.mxu1 %v1878_v13 }
 0x11a   : > { %v992_v45 = vpop.permute.xlu0 %991  ;;  %v975_v62 = vpop.permute.xlu1 %974 }
 0x11b   : > { %v1058_v48 = vsel %vm1052_vm6, %v1025_v21, %v992_v45  ;;  %v1041_v2 = vsel %vm1019_vm5, %v2190_v31, %v975_v62 }
 0x11c   : > { %1718 = vmatmul.mubr.msk.bf16.gmra.mrb[8].mxu0 %vm1115_vm7, %v1058_v48 }
 0x11d   : > { %1217 = vmatprep.mubr.bf16.mxu0 %v1878_v13 }
 0x11e   : > { %v961_v51 = vpop.permute.xlu0 %960  ;;  %v1008_v18 = vpop.permute.xlu1 %1007 }
 0x11f   : > { %v1074_v53 = vsel %vm1052_vm6, %v1041_v2, %v1008_v18  ;;  %v1027_v28 = vsel %vm1019_vm5, %v2197_v33, %v961_v51 }
 0x120   : > { %1726 = vmatmul.mubr.msk.bf16.gmra.mrb[8].mxu1 %vm1115_vm7, %v1074_v53 }
 0x121   : > { %1297 = vmatprep.mubr.bf16.mxu1 %v1878_v13 }
 0x122   : > { %v994_v54 = vpop.permute.xlu0 %993  ;;  %v977_v23 = vpop.permute.xlu1 %976 }
 0x123   : > { %v1060_v56 = vsel %vm1052_vm6, %v1027_v28, %v994_v54  ;;  %v1043_v31 = vsel %vm1019_vm5, %v2208_v37, %v977_v23 }
 0x124   : > { %1719 = vmatmul.mubr.msk.bf16.gmra.mrb[12].mxu0 %vm1115_vm7, %v1060_v56 }
 0x125   : > { %1227 = vmatprep.mubr.bf16.mxu0 %v1878_v13 }
 0x126   : > { %v963_v59 = vpop.permute.xlu0 %962  ;;  %v1010_v49 = vpop.permute.xlu1 %1009 }
 0x127   : > { %v1076_v60 = vsel %vm1052_vm6, %v1043_v31, %v1010_v49  ;;  %v1029_v33 = vsel %vm1019_vm5, %v2215_v41, %v963_v59 }
 0x128   : > { %1727 = vmatmul.mubr.msk.bf16.gmra.mrb[12].mxu1 %vm1115_vm7, %v1076_v60 }
 0x129   : > { %1307 = vmatprep.mubr.bf16.mxu1 %v1878_v13 }
 0x12a   : > { %v996_v61 = vpop.permute.xlu0 %995  ;;  %v979_v43 = vpop.permute.xlu1 %978 }
 0x12b   : > { %v1062_v1 = vsel %vm1052_vm6, %v1029_v33, %v996_v61  ;;  %v1045_v37 = vsel %vm1019_vm5, %v2226_v46, %v979_v43 }
 0x12c   : > { %1720 = vmatmul.mubr.msk.bf16.gmra.mrb[16].mxu0 %vm1115_vm7, %v1062_v1 }
 0x12d   : > { %1237 = vmatprep.mubr.bf16.mxu0 %v1878_v13 }
 0x12e   : > { %v965_v4 = vpop.permute.xlu0 %964  ;;  %v1012_v15 = vpop.permute.xlu1 %1011 }
 0x12f   : > { %v1078_v7 = vsel %vm1052_vm6, %v1045_v37, %v1012_v15  ;;  %v1031_v41 = vsel %vm1019_vm5, %v2233_v50, %v965_v4 }
 0x130   : > { %1728 = vmatmul.mubr.msk.bf16.gmra.mrb[16].mxu1 %vm1115_vm7, %v1078_v7 }
 0x131   : > { %1317 = vmatprep.mubr.bf16.mxu1 %v1878_v13 }
 0x132   : > { %v998_v9 = vpop.permute.xlu0 %997  ;;  %v981_v5 = vpop.permute.xlu1 %980 }
 0x133   : > { %v1064_v11 = vsel %vm1052_vm6, %v1031_v41, %v998_v9  ;;  %v1047_v46 = vsel %vm1019_vm5, %v2244_v55, %v981_v5 }
 0x134   : > { %1721 = vmatmul.mubr.msk.bf16.gmra.mrb[20].mxu0 %vm1115_vm7, %v1064_v11 }
 0x135   : > { %1247 = vmatprep.mubr.bf16.mxu0 %v1878_v13 }
 0x136   : > { %v967_v12 = vpop.permute.xlu0 %966  ;;  %v1014_v14 = vpop.permute.xlu1 %1013 }
 0x137   : > { %v1080_v38 = vsel %vm1052_vm6, %v1047_v46, %v1014_v14  ;;  %v1033_v50 = vsel %vm1019_vm5, %v2251_v58, %v967_v12 }
 0x138   : > { %1729 = vmatmul.mubr.msk.bf16.gmra.mrb[20].mxu1 %vm1115_vm7, %v1080_v38 }
 0x139   : > { %1327 = vmatprep.mubr.bf16.mxu1 %v1878_v13 }
 0x13a   : > { %v1000_v17 = vpop.permute.xlu0 %999  ;;  %v983_v19 = vpop.permute.xlu1 %982 }
 0x13b   : > { %v1066_v20 = vsel %vm1052_vm6, %v1033_v50, %v1000_v17  ;;  %v1049_v55 = vsel %vm1019_vm5, %v2262_v63, %v983_v19 }
 0x13c   : > { %1722 = vmatmul.mubr.msk.bf16.gmra.mrb[24].mxu0 %vm1115_vm7, %v1066_v20 }
 0x13d   : > { %1257 = vmatprep.mubr.bf16.mxu0 %v1878_v13 }
 0x13e   : > { %v969_v39 = vpop.permute.xlu0 %968  ;;  %v1016_v22 = vpop.permute.xlu1 %1015 }
 0x13f   : > { %v1082_v24 = vsel %vm1052_vm6, %v1049_v55, %v1016_v22  ;;  %v1035_v58 = vsel %vm1019_vm5, %v2269_v3, %v969_v39 }
 0x140   : > { %1730 = vmatmul.mubr.msk.bf16.gmra.mrb[24].mxu1 %vm1115_vm7, %v1082_v24 }
 0x141   : > { %1337 = vmatprep.mubr.bf16.mxu1 %v1878_v13  ;;  %v2384_v13 = vld [vmem:[%s2596_s3] ss:$0 sm:$0xff] }
 0x142   : > { %v1002_v26 = vpop.permute.xlu0 %1001  ;;  %v985_v27 = vpop.permute.xlu1 %984 }
 0x143   : > { %v1068_v16 = vsel %vm1052_vm6, %v1035_v58, %v1002_v26  ;;  %v1051_v63 = vsel %vm1019_vm5, %v2280_v10, %v985_v27 }
 0x144   : > { %1723 = vmatmul.mubr.msk.bf16.gmra.mrb[28].mxu0 %vm1115_vm7, %v1068_v16 }
 0x146   : > { %v1018_v29 = vpop.permute.xlu1 %1017 }
 0x147   : > { %v1084_v8 = vsel %vm1052_vm6, %v1051_v63, %v1018_v29 }
 0x148   : > { %1731 = vmatmul.mubr.msk.bf16.gmra.mrb[28].mxu1 %vm1115_vm7, %v1084_v8 }
 0x1df   : > { %v1189_v3 = vpop.f32.mrb[0].mxu0 }
 0x1e0   : > { %v1354_v30 = vadd.f32 %v2384_v13, %v1189_v3  ;;  %v1191_v0 = vpop.f32.mrb[1].mxu0 }
 0x1e1   : > { %v1450_v10 = vadd.f32 %v2384_v13, %v1191_v0  ;;  %v1193_v6 = vpop.f32.mrb[2].mxu0 }
 0x1e2   : > { %v1386_v52 = vmax.f32 %v1354_v30, 0.0  ;;  %v1355_v32 = vadd.f32 %v2384_v13, %v1193_v6  ;;  %v1195_v34 = vpop.f32.mrb[3].mxu0 }
 0x1e3   : > { %v1482_v25 = vmax.f32 %v1450_v10, 0.0  ;;  %v1451_v35 = vadd.f32 %v2384_v13, %v1195_v34  ;;  %v1269_v36 = vpop.f32.mrb[0].mxu1 }
 0x1e4   : > { %1418 = vst.msk [vmem:[%s2391_s24] sm:$0xff] %vm900_vm4, %v1386_v52  ;;  %v1387_v47 = vmax.f32 %v1355_v32, 0.0  ;;  %v1370_v40 = vadd.f32 %v2384_v13, %v1269_v36  ;;  %v1271_v42 = vpop.f32.mrb[1].mxu1 }
 0x1e5   : > { %1733 = vst.msk [vmem:[%s2391_s24 + $0x10] sm:$0xff] %vm900_vm4, %v1482_v25  ;;  %v1483_v57 = vmax.f32 %v1451_v35, 0.0  ;;  %v1466_v44 = vadd.f32 %v2384_v13, %v1271_v42  ;;  %v1273_v21 = vpop.f32.mrb[2].mxu1 }
 0x1e6   : > { %1419 = vst.msk [vmem:[%s2391_s24 + $0x8] sm:$0xff] %vm900_vm4, %v1387_v47  ;;  %v1402_v45 = vmax.f32 %v1370_v40, 0.0  ;;  %v1371_v62 = vadd.f32 %v2384_v13, %v1273_v21  ;;  %v1275_v48 = vpop.f32.mrb[3].mxu1 }
 0x1e7   : > { %1734 = vst.msk [vmem:[%s2391_s24 + $0x18] sm:$0xff] %vm900_vm4, %v1483_v57  ;;  %v1498_v2 = vmax.f32 %v1466_v44, 0.0  ;;  %v1467_v51 = vadd.f32 %v2384_v13, %v1275_v48  ;;  %v1199_v18 = vpop.f32.mrb[4].mxu0 }
 0x1e8   : > { %1434 = vst.msk [vmem:[%s2391_s24 + $0x100] sm:$0xff] %vm900_vm4, %v1402_v45  ;;  %v1403_v53 = vmax.f32 %v1371_v62, 0.0  ;;  %v1356_v28 = vadd.f32 %v2384_v13, %v1199_v18  ;;  %v1201_v54 = vpop.f32.mrb[5].mxu0 }
 0x1e9   : > { %1749 = vst.msk [vmem:[%s2391_s24 + $0x110] sm:$0xff] %vm900_vm4, %v1498_v2  ;;  %v1499_v23 = vmax.f32 %v1467_v51, 0.0  ;;  %v1452_v56 = vadd.f32 %v2384_v13, %v1201_v54  ;;  %v1203_v31 = vpop.f32.mrb[6].mxu0 }
 0x1ea   : > { %1435 = vst.msk [vmem:[%s2391_s24 + $0x108] sm:$0xff] %vm900_vm4, %v1403_v53  ;;  %v1388_v59 = vmax.f32 %v1356_v28, 0.0  ;;  %v1357_v49 = vadd.f32 %v2384_v13, %v1203_v31  ;;  %v1205_v60 = vpop.f32.mrb[7].mxu0 }
 0x1eb   : > { %1750 = vst.msk [vmem:[%s2391_s24 + $0x118] sm:$0xff] %vm900_vm4, %v1499_v23  ;;  %v1484_v33 = vmax.f32 %v1452_v56, 0.0  ;;  %v1453_v61 = vadd.f32 %v2384_v13, %v1205_v60  ;;  %v1279_v43 = vpop.f32.mrb[4].mxu1 }
 0x1ec   : > { %1420 = vst.msk [vmem:[%s2391_s24 + $0x20] sm:$0xff] %vm900_vm4, %v1388_v59  ;;  %v1389_v1 = vmax.f32 %v1357_v49, 0.0  ;;  %v1372_v37 = vadd.f32 %v2384_v13, %v1279_v43  ;;  %v1281_v4 = vpop.f32.mrb[5].mxu1 }
 0x1ed   : > { %1735 = vst.msk [vmem:[%s2391_s24 + $0x30] sm:$0xff] %vm900_vm4, %v1484_v33  ;;  %v1485_v15 = vmax.f32 %v1453_v61, 0.0  ;;  %v1468_v7 = vadd.f32 %v2384_v13, %v1281_v4  ;;  %v1283_v41 = vpop.f32.mrb[6].mxu1 }
 0x1ee   : > { %1421 = vst.msk [vmem:[%s2391_s24 + $0x28] sm:$0xff] %vm900_vm4, %v1389_v1  ;;  %v1404_v9 = vmax.f32 %v1372_v37, 0.0  ;;  %v1373_v5 = vadd.f32 %v2384_v13, %v1283_v41  ;;  %v1285_v11 = vpop.f32.mrb[7].mxu1 }
 0x1ef   : > { %1736 = vst.msk [vmem:[%s2391_s24 + $0x38] sm:$0xff] %vm900_vm4, %v1485_v15  ;;  %v1500_v46 = vmax.f32 %v1468_v7, 0.0  ;;  %v1469_v12 = vadd.f32 %v2384_v13, %v1285_v11  ;;  %v1209_v14 = vpop.f32.mrb[8].mxu0 }
 0x1f0   : > { %1436 = vst.msk [vmem:[%s2391_s24 + $0x120] sm:$0xff] %vm900_vm4, %v1404_v9  ;;  %v1405_v38 = vmax.f32 %v1373_v5, 0.0  ;;  %v1358_v50 = vadd.f32 %v2384_v13, %v1209_v14  ;;  %v1211_v17 = vpop.f32.mrb[9].mxu0 }
 0x1f1   : > { %1751 = vst.msk [vmem:[%s2391_s24 + $0x130] sm:$0xff] %vm900_vm4, %v1500_v46  ;;  %v1501_v19 = vmax.f32 %v1469_v12, 0.0  ;;  %v1454_v20 = vadd.f32 %v2384_v13, %v1211_v17  ;;  %v1213_v55 = vpop.f32.mrb[10].mxu0 }
 0x1f2   : > { %1437 = vst.msk [vmem:[%s2391_s24 + $0x128] sm:$0xff] %vm900_vm4, %v1405_v38  ;;  %v1390_v39 = vmax.f32 %v1358_v50, 0.0  ;;  %v1359_v22 = vadd.f32 %v2384_v13, %v1213_v55  ;;  %v1215_v24 = vpop.f32.mrb[11].mxu0 }
 0x1f3   : > { %1752 = vst.msk [vmem:[%s2391_s24 + $0x138] sm:$0xff] %vm900_vm4, %v1501_v19  ;;  %v1486_v58 = vmax.f32 %v1454_v20, 0.0  ;;  %v1455_v26 = vadd.f32 %v2384_v13, %v1215_v24  ;;  %v1289_v27 = vpop.f32.mrb[8].mxu1 }
 0x1f4   : > { %1422 = vst.msk [vmem:[%s2391_s24 + $0x40] sm:$0xff] %vm900_vm4, %v1390_v39  ;;  %v1391_v16 = vmax.f32 %v1359_v22, 0.0  ;;  %v1374_v63 = vadd.f32 %v2384_v13, %v1289_v27  ;;  %v1291_v29 = vpop.f32.mrb[9].mxu1 }
 0x1f5   : > { %1737 = vst.msk [vmem:[%s2391_s24 + $0x50] sm:$0xff] %vm900_vm4, %v1486_v58  ;;  %v1487_v8 = vmax.f32 %v1455_v26, 0.0  ;;  %v1470_v3 = vadd.f32 %v2384_v13, %v1291_v29  ;;  %v1293_v30 = vpop.f32.mrb[10].mxu1 }
 0x1f6   : > { %1423 = vst.msk [vmem:[%s2391_s24 + $0x48] sm:$0xff] %vm900_vm4, %v1391_v16  ;;  %v1406_v0 = vmax.f32 %v1374_v63, 0.0  ;;  %v1375_v10 = vadd.f32 %v2384_v13, %v1293_v30  ;;  %v1295_v6 = vpop.f32.mrb[11].mxu1 }
 0x1f7   : > { %1738 = vst.msk [vmem:[%s2391_s24 + $0x58] sm:$0xff] %vm900_vm4, %v1487_v8  ;;  %v1502_v52 = vmax.f32 %v1470_v3, 0.0  ;;  %v1471_v32 = vadd.f32 %v2384_v13, %v1295_v6  ;;  %v1219_v34 = vpop.f32.mrb[12].mxu0 }
 0x1f8   : > { %1438 = vst.msk [vmem:[%s2391_s24 + $0x140] sm:$0xff] %vm900_vm4, %v1406_v0  ;;  %v1407_v25 = vmax.f32 %v1375_v10, 0.0  ;;  %v1360_v35 = vadd.f32 %v2384_v13, %v1219_v34  ;;  %v1221_v36 = vpop.f32.mrb[13].mxu0 }
 0x1f9   : > { %1753 = vst.msk [vmem:[%s2391_s24 + $0x150] sm:$0xff] %vm900_vm4, %v1502_v52  ;;  %v1503_v47 = vmax.f32 %v1471_v32, 0.0  ;;  %v1456_v40 = vadd.f32 %v2384_v13, %v1221_v36  ;;  %v1223_v42 = vpop.f32.mrb[14].mxu0 }
 0x1fa   : > { %1439 = vst.msk [vmem:[%s2391_s24 + $0x148] sm:$0xff] %vm900_vm4, %v1407_v25  ;;  %v1392_v57 = vmax.f32 %v1360_v35, 0.0  ;;  %v1361_v44 = vadd.f32 %v2384_v13, %v1223_v42  ;;  %v1225_v21 = vpop.f32.mrb[15].mxu0 }
 0x1fb   : > { %1754 = vst.msk [vmem:[%s2391_s24 + $0x158] sm:$0xff] %vm900_vm4, %v1503_v47  ;;  %v1488_v45 = vmax.f32 %v1456_v40, 0.0  ;;  %v1457_v62 = vadd.f32 %v2384_v13, %v1225_v21  ;;  %v1299_v48 = vpop.f32.mrb[12].mxu1 }
 0x1fc   : > { %1424 = vst.msk [vmem:[%s2391_s24 + $0x60] sm:$0xff] %vm900_vm4, %v1392_v57  ;;  %v1393_v2 = vmax.f32 %v1361_v44, 0.0  ;;  %v1376_v51 = vadd.f32 %v2384_v13, %v1299_v48  ;;  %v1301_v18 = vpop.f32.mrb[13].mxu1 }
 0x1fd   : > { %1739 = vst.msk [vmem:[%s2391_s24 + $0x70] sm:$0xff] %vm900_vm4, %v1488_v45  ;;  %v1489_v53 = vmax.f32 %v1457_v62, 0.0  ;;  %v1472_v28 = vadd.f32 %v2384_v13, %v1301_v18  ;;  %v1303_v54 = vpop.f32.mrb[14].mxu1 }
 0x1fe   : > { %1425 = vst.msk [vmem:[%s2391_s24 + $0x68] sm:$0xff] %vm900_vm4, %v1393_v2  ;;  %v1408_v23 = vmax.f32 %v1376_v51, 0.0  ;;  %v1377_v56 = vadd.f32 %v2384_v13, %v1303_v54  ;;  %v1305_v31 = vpop.f32.mrb[15].mxu1 }
 0x1ff   : > { %1740 = vst.msk [vmem:[%s2391_s24 + $0x78] sm:$0xff] %vm900_vm4, %v1489_v53  ;;  %v1504_v59 = vmax.f32 %v1472_v28, 0.0  ;;  %v1473_v49 = vadd.f32 %v2384_v13, %v1305_v31  ;;  %v1229_v60 = vpop.f32.mrb[16].mxu0 }
 0x200   : > { %1440 = vst.msk [vmem:[%s2391_s24 + $0x160] sm:$0xff] %vm900_vm4, %v1408_v23  ;;  %v1409_v33 = vmax.f32 %v1377_v56, 0.0  ;;  %v1362_v61 = vadd.f32 %v2384_v13, %v1229_v60  ;;  %v1231_v43 = vpop.f32.mrb[17].mxu0 }
 0x201   : > { %1755 = vst.msk [vmem:[%s2391_s24 + $0x170] sm:$0xff] %vm900_vm4, %v1504_v59  ;;  %v1505_v1 = vmax.f32 %v1473_v49, 0.0  ;;  %v1458_v37 = vadd.f32 %v2384_v13, %v1231_v43  ;;  %v1233_v4 = vpop.f32.mrb[18].mxu0 }
 0x202   : > { %1441 = vst.msk [vmem:[%s2391_s24 + $0x168] sm:$0xff] %vm900_vm4, %v1409_v33  ;;  %v1394_v15 = vmax.f32 %v1362_v61, 0.0  ;;  %v1363_v7 = vadd.f32 %v2384_v13, %v1233_v4  ;;  %v1235_v41 = vpop.f32.mrb[19].mxu0 }
 0x203   : > { %1756 = vst.msk [vmem:[%s2391_s24 + $0x178] sm:$0xff] %vm900_vm4, %v1505_v1  ;;  %v1490_v9 = vmax.f32 %v1458_v37, 0.0  ;;  %v1459_v5 = vadd.f32 %v2384_v13, %v1235_v41  ;;  %v1309_v11 = vpop.f32.mrb[16].mxu1 }
 0x204   : > { %1426 = vst.msk [vmem:[%s2391_s24 + $0x80] sm:$0xff] %vm900_vm4, %v1394_v15  ;;  %v1395_v46 = vmax.f32 %v1363_v7, 0.0  ;;  %v1378_v12 = vadd.f32 %v2384_v13, %v1309_v11  ;;  %v1311_v14 = vpop.f32.mrb[17].mxu1 }
 0x205   : > { %1741 = vst.msk [vmem:[%s2391_s24 + $0x90] sm:$0xff] %vm900_vm4, %v1490_v9  ;;  %v1491_v38 = vmax.f32 %v1459_v5, 0.0  ;;  %v1474_v50 = vadd.f32 %v2384_v13, %v1311_v14  ;;  %v1313_v17 = vpop.f32.mrb[18].mxu1 }
 0x206   : > { %1427 = vst.msk [vmem:[%s2391_s24 + $0x88] sm:$0xff] %vm900_vm4, %v1395_v46  ;;  %v1410_v19 = vmax.f32 %v1378_v12, 0.0  ;;  %v1379_v20 = vadd.f32 %v2384_v13, %v1313_v17  ;;  %v1315_v55 = vpop.f32.mrb[19].mxu1 }
 0x207   : > { %1742 = vst.msk [vmem:[%s2391_s24 + $0x98] sm:$0xff] %vm900_vm4, %v1491_v38  ;;  %v1506_v39 = vmax.f32 %v1474_v50, 0.0  ;;  %v1475_v22 = vadd.f32 %v2384_v13, %v1315_v55  ;;  %v1239_v24 = vpop.f32.mrb[20].mxu0 }
 0x208   : > { %1442 = vst.msk [vmem:[%s2391_s24 + $0x180] sm:$0xff] %vm900_vm4, %v1410_v19  ;;  %v1411_v58 = vmax.f32 %v1379_v20, 0.0  ;;  %v1364_v26 = vadd.f32 %v2384_v13, %v1239_v24  ;;  %v1241_v27 = vpop.f32.mrb[21].mxu0 }
 0x209   : > { %1757 = vst.msk [vmem:[%s2391_s24 + $0x190] sm:$0xff] %vm900_vm4, %v1506_v39  ;;  %v1507_v16 = vmax.f32 %v1475_v22, 0.0  ;;  %v1460_v63 = vadd.f32 %v2384_v13, %v1241_v27  ;;  %v1243_v29 = vpop.f32.mrb[22].mxu0 }
 0x20a   : > { %1443 = vst.msk [vmem:[%s2391_s24 + $0x188] sm:$0xff] %vm900_vm4, %v1411_v58  ;;  %v1396_v8 = vmax.f32 %v1364_v26, 0.0  ;;  %v1365_v3 = vadd.f32 %v2384_v13, %v1243_v29  ;;  %v1245_v30 = vpop.f32.mrb[23].mxu0 }
 0x20b   : > { %1758 = vst.msk [vmem:[%s2391_s24 + $0x198] sm:$0xff] %vm900_vm4, %v1507_v16  ;;  %v1492_v0 = vmax.f32 %v1460_v63, 0.0  ;;  %v1461_v10 = vadd.f32 %v2384_v13, %v1245_v30  ;;  %v1319_v6 = vpop.f32.mrb[20].mxu1 }
 0x20c   : > { %1428 = vst.msk [vmem:[%s2391_s24 + $0xa0] sm:$0xff] %vm900_vm4, %v1396_v8  ;;  %v1397_v52 = vmax.f32 %v1365_v3, 0.0  ;;  %v1380_v32 = vadd.f32 %v2384_v13, %v1319_v6  ;;  %v1321_v34 = vpop.f32.mrb[21].mxu1 }
 0x20d   : > { %1743 = vst.msk [vmem:[%s2391_s24 + $0xb0] sm:$0xff] %vm900_vm4, %v1492_v0  ;;  %v1493_v25 = vmax.f32 %v1461_v10, 0.0  ;;  %v1476_v35 = vadd.f32 %v2384_v13, %v1321_v34  ;;  %v1323_v36 = vpop.f32.mrb[22].mxu1 }
 0x20e   : > { %1429 = vst.msk [vmem:[%s2391_s24 + $0xa8] sm:$0xff] %vm900_vm4, %v1397_v52  ;;  %v1412_v47 = vmax.f32 %v1380_v32, 0.0  ;;  %v1381_v40 = vadd.f32 %v2384_v13, %v1323_v36  ;;  %v1325_v42 = vpop.f32.mrb[23].mxu1 }
 0x20f   : > { %1744 = vst.msk [vmem:[%s2391_s24 + $0xb8] sm:$0xff] %vm900_vm4, %v1493_v25  ;;  %v1508_v57 = vmax.f32 %v1476_v35, 0.0  ;;  %v1477_v44 = vadd.f32 %v2384_v13, %v1325_v42  ;;  %v1249_v21 = vpop.f32.mrb[24].mxu0 }
 0x210   : > { %1444 = vst.msk [vmem:[%s2391_s24 + $0x1a0] sm:$0xff] %vm900_vm4, %v1412_v47  ;;  %v1413_v45 = vmax.f32 %v1381_v40, 0.0  ;;  %v1366_v62 = vadd.f32 %v2384_v13, %v1249_v21  ;;  %v1251_v48 = vpop.f32.mrb[25].mxu0 }
 0x211   : > { %1759 = vst.msk [vmem:[%s2391_s24 + $0x1b0] sm:$0xff] %vm900_vm4, %v1508_v57  ;;  %v1509_v2 = vmax.f32 %v1477_v44, 0.0  ;;  %v1462_v51 = vadd.f32 %v2384_v13, %v1251_v48  ;;  %v1253_v18 = vpop.f32.mrb[26].mxu0 }
 0x212   : > { %1445 = vst.msk [vmem:[%s2391_s24 + $0x1a8] sm:$0xff] %vm900_vm4, %v1413_v45  ;;  %v1398_v53 = vmax.f32 %v1366_v62, 0.0  ;;  %v1367_v28 = vadd.f32 %v2384_v13, %v1253_v18  ;;  %v1255_v54 = vpop.f32.mrb[27].mxu0 }
 0x213   : > { %1760 = vst.msk [vmem:[%s2391_s24 + $0x1b8] sm:$0xff] %vm900_vm4, %v1509_v2  ;;  %v1494_v23 = vmax.f32 %v1462_v51, 0.0  ;;  %v1463_v56 = vadd.f32 %v2384_v13, %v1255_v54  ;;  %v1329_v31 = vpop.f32.mrb[24].mxu1 }
 0x214   : > { %1430 = vst.msk [vmem:[%s2391_s24 + $0xc0] sm:$0xff] %vm900_vm4, %v1398_v53  ;;  %v1399_v59 = vmax.f32 %v1367_v28, 0.0  ;;  %v1382_v49 = vadd.f32 %v2384_v13, %v1329_v31  ;;  %v1331_v60 = vpop.f32.mrb[25].mxu1 }
 0x215   : > { %1745 = vst.msk [vmem:[%s2391_s24 + $0xd0] sm:$0xff] %vm900_vm4, %v1494_v23  ;;  %v1495_v33 = vmax.f32 %v1463_v56, 0.0  ;;  %v1478_v61 = vadd.f32 %v2384_v13, %v1331_v60  ;;  %v1333_v43 = vpop.f32.mrb[26].mxu1 }
 0x216   : > { %1431 = vst.msk [vmem:[%s2391_s24 + $0xc8] sm:$0xff] %vm900_vm4, %v1399_v59  ;;  %v1414_v1 = vmax.f32 %v1382_v49, 0.0  ;;  %v1383_v37 = vadd.f32 %v2384_v13, %v1333_v43  ;;  %v1335_v4 = vpop.f32.mrb[27].mxu1 }
 0x217   : > { %1746 = vst.msk [vmem:[%s2391_s24 + $0xd8] sm:$0xff] %vm900_vm4, %v1495_v33  ;;  %v1510_v15 = vmax.f32 %v1478_v61, 0.0  ;;  %v1479_v7 = vadd.f32 %v2384_v13, %v1335_v4  ;;  %v1259_v41 = vpop.f32.mrb[28].mxu0 }
 0x218   : > { %1446 = vst.msk [vmem:[%s2391_s24 + $0x1c0] sm:$0xff] %vm900_vm4, %v1414_v1  ;;  %v1415_v9 = vmax.f32 %v1383_v37, 0.0  ;;  %v1368_v5 = vadd.f32 %v2384_v13, %v1259_v41  ;;  %v1261_v11 = vpop.f32.mrb[29].mxu0 }
 0x219   : > { %1761 = vst.msk [vmem:[%s2391_s24 + $0x1d0] sm:$0xff] %vm900_vm4, %v1510_v15  ;;  %v1511_v46 = vmax.f32 %v1479_v7, 0.0  ;;  %v1464_v12 = vadd.f32 %v2384_v13, %v1261_v11  ;;  %v1263_v14 = vpop.f32.mrb[30].mxu0 }
 0x21a   : > { %1447 = vst.msk [vmem:[%s2391_s24 + $0x1c8] sm:$0xff] %vm900_vm4, %v1415_v9  ;;  %v1400_v38 = vmax.f32 %v1368_v5, 0.0  ;;  %v1369_v50 = vadd.f32 %v2384_v13, %v1263_v14  ;;  %v1265_v17 = vpop.f32.mrb[31].mxu0 }
 0x21b   : > { %1762 = vst.msk [vmem:[%s2391_s24 + $0x1d8] sm:$0xff] %vm900_vm4, %v1511_v46  ;;  %v1496_v19 = vmax.f32 %v1464_v12, 0.0  ;;  %v1465_v20 = vadd.f32 %v2384_v13, %v1265_v17  ;;  %v1339_v55 = vpop.f32.mrb[28].mxu1 }
 0x21c   : > { %1432 = vst.msk [vmem:[%s2391_s24 + $0xe0] sm:$0xff] %vm900_vm4, %v1400_v38  ;;  %v1401_v39 = vmax.f32 %v1369_v50, 0.0  ;;  %v1384_v22 = vadd.f32 %v2384_v13, %v1339_v55  ;;  %v1341_v24 = vpop.f32.mrb[29].mxu1 }
 0x21d   : > { %1747 = vst.msk [vmem:[%s2391_s24 + $0xf0] sm:$0xff] %vm900_vm4, %v1496_v19  ;;  %v1497_v58 = vmax.f32 %v1465_v20, 0.0  ;;  %v1480_v26 = vadd.f32 %v2384_v13, %v1341_v24  ;;  %v1343_v27 = vpop.f32.mrb[30].mxu1 }
 0x21e   : > { %1433 = vst.msk [vmem:[%s2391_s24 + $0xe8] sm:$0xff] %vm900_vm4, %v1401_v39  ;;  %v1416_v16 = vmax.f32 %v1384_v22, 0.0  ;;  %v1385_v63 = vadd.f32 %v2384_v13, %v1343_v27  ;;  %v1345_v29 = vpop.f32.mrb[31].mxu1 }
 0x21f   : > { %1748 = vst.msk [vmem:[%s2391_s24 + $0xf8] sm:$0xff] %vm900_vm4, %v1497_v58  ;;  %v1512_v8 = vmax.f32 %v1480_v26, 0.0  ;;  %v1481_v3 = vadd.f32 %v2384_v13, %v1345_v29 }
 0x220   : > { %1448 = vst.msk [vmem:[%s2391_s24 + $0x1e0] sm:$0xff] %vm900_vm4, %v1416_v16  ;;  %v1417_v30 = vmax.f32 %v1385_v63, 0.0 }
 0x221   : > { %1763 = vst.msk [vmem:[%s2391_s24 + $0x1f0] sm:$0xff] %vm900_vm4, %v1512_v8  ;;  %v1513_v0 = vmax.f32 %v1481_v3, 0.0 }
 0x222   : > { %1449 = vst.msk [vmem:[%s2391_s24 + $0x1e8] sm:$0xff] %vm900_vm4, %v1417_v30 }
 0x223   : > { %1764 = vst.msk [vmem:[%s2391_s24 + $0x1f8] sm:$0xff] %vm900_vm4, %v1513_v0 }
 0x224 PF: > { %s14_s17 = sadd.s32 1, %s1874_s17   ;;  %s2598_s15 = smov %s1870_s16 }
 0x225   : > { %p11_p5 = scmp.ge.s32.totalorder %s14_s17, 4   ;;  %s2599_s16 = smov %s2601_s18 }
 0x227   :  { %13 = sbr.rel (!%p11_p5) target bundleno = 2 (0x2), region = 70 }

</bundles_post_ra>
